<compile_context>
chip_gen: v6e
topology: v6e:2x2x1
jax: 0.10.0
libtpu: 0.0.40
codegen_flags: <defaults>
</compile_context>

<pallas_src>
import functools

import jax
import jax.numpy as jnp
from jax.experimental import pallas as pl
from jax.experimental.pallas import tpu as pltpu

EPS = 1e-5
LANE = 128


def _conv_stats_kernel(w_ref, p_ref, y_ref, stats_ref, *, cout):
    # w_ref:     (Cout, K)       bf16  weight-normed conv weight (bias dropped: BN cancels it)
    # p_ref:     (K, tile_R)     bf16  transposed patch tile (R lane-dense)
    # y_ref:     (Cout, tile_R)  f32   pre-BN conv output (lane-dense stores)
    # stats_ref: (2*Cout, 128)   f32   per-tile partial sums, broadcast across lanes
    y = jnp.dot(w_ref[...], p_ref[...], preferred_element_type=jnp.float32)
    y_ref[...] = y
    s1 = jnp.sum(y, axis=1, keepdims=True)        # (Cout, 1) sum
    s2 = jnp.sum(y * y, axis=1, keepdims=True)    # (Cout, 1) sum of squares
    stats_ref[0:cout, :] = jnp.broadcast_to(s1, (cout, LANE))
    stats_ref[cout:2 * cout, :] = jnp.broadcast_to(s2, (cout, LANE))


def _bn_sigmoid_kernel(scale_ref, shift_ref, y_ref, o_ref):
    # Fused BatchNorm (precomputed scale/shift) + sigmoid, all f32 elementwise.
    z = y_ref[...] * scale_ref[...] + shift_ref[...]
    o_ref[...] = pl.reciprocal(1.0 + jnp.exp(-z), approx=True)


def encoder_block_forward(x, v, g, bias, gamma, beta, *, kernel_size, stride, padding):
    """Forward pass of encoder_block.

    x:     (N, Cin, H, W)     NCHW, like PyTorch
    v:     (Cout, Cin, k, k)  weight_norm 'v'
    g:     (Cout,)            weight_norm 'g'
    bias:  (Cout,)            conv bias (unused: cancelled exactly by BN mean subtraction)
    gamma: (Cout,)            BatchNorm weight
    beta:  (Cout,)            BatchNorm bias
    """
    del bias  # per-channel bias is removed by the BatchNorm mean subtraction

    N, Cin, H, W = x.shape
    Cout = v.shape[0]
    k, s, p = kernel_size, stride, padding

    # ----- weight norm: w = g * v / ||v||_2 (norm over Cin,kh,kw per out-channel) -----
    v32 = v.astype(jnp.float32)
    v_norm = jnp.sqrt(jnp.sum(v32 ** 2, axis=(1, 2, 3), keepdims=True))
    w = g.reshape(Cout, 1, 1, 1).astype(jnp.float32) * v32 / v_norm   # (Cout, Cin, k, k)

    # ----- circular padding (PyTorch padding_mode='circular') -----
    x_pad = jnp.pad(x.astype(jnp.float32), ((0, 0), (0, 0), (p, p), (p, p)), mode="wrap")
    Hp, Wp = H + 2 * p, W + 2 * p
    Ho = (Hp - k) // s + 1
    Wo = (Wp - k) // s + 1

    # ----- transposed patch matrix P^T: (K, R), K ordered (Cin, kh, kw) like w.reshape -----
    cols = []
    for i in range(k):
        for j in range(k):
            cols.append(x_pad[:, :, i:i + s * Ho:s, j:j + s * Wo:s])   # (N, Cin, Ho, Wo)
    pt = jnp.stack(cols, axis=2)              # (N, Cin, k*k, Ho, Wo)
    pt = pt.transpose(1, 2, 0, 3, 4)          # (Cin, k*k, N, Ho, Wo)
    K = Cin * k * k
    R = N * Ho * Wo
    patches_t = pt.reshape(K, R).astype(jnp.bfloat16)       # bf16 MXU operand

    # R tiling: 128-multiple lanes, capped at 512 rows -> ~64 KiB/buf, fine on all chips.
    tile_r = min(512, pl.cdiv(R, LANE) * LANE)
    num_tiles = pl.cdiv(R, tile_r)
    r_pad = num_tiles * tile_r
    if r_pad != R:
        # zero padding -> padded columns contribute 0 to sum / sum-of-squares (no bias)
        patches_t = jnp.pad(patches_t, ((0, 0), (0, r_pad - R)))

    w_mat = w.reshape(Cout, K).astype(jnp.bfloat16)          # (Cout, K) bf16

    # ----- pass 1: conv matmul + per-tile BN partial statistics -----
    bytes1 = int(patches_t.size * 2 + w_mat.size * 2
                 + Cout * r_pad * 4 + 2 * Cout * num_tiles * LANE * 4)
    y_t, stats = pl.pallas_call(
        functools.partial(_conv_stats_kernel, cout=Cout),
        out_shape=(jax.ShapeDtypeStruct((Cout, r_pad), jnp.float32),
                   jax.ShapeDtypeStruct((2 * Cout, num_tiles * LANE), jnp.float32)),
        grid=(num_tiles,),
        in_specs=[
            pl.BlockSpec((Cout, K), lambda r: (0, 0)),
            pl.BlockSpec((K, tile_r), lambda r: (0, r)),
        ],
        out_specs=(
            pl.BlockSpec((Cout, tile_r), lambda r: (0, r)),
            pl.BlockSpec((2 * Cout, LANE), lambda r: (0, r)),
        ),
        compiler_params=pltpu.CompilerParams(dimension_semantics=("parallel",)),
        cost_estimate=pl.CostEstimate(flops=int(2 * Cout * K * r_pad + 3 * Cout * r_pad),
                                      transcendentals=0,
                                      bytes_accessed=bytes1),
    )(w_mat, patches_t)

    # ----- finalize BN stats (tiny, Cout channels) -----
    part = stats.reshape(2 * Cout, num_tiles, LANE)[:, :, 0]   # (2*Cout, num_tiles)
    sum_y = jnp.sum(part[:Cout], axis=1)
    sum_sq = jnp.sum(part[Cout:], axis=1)
    mean = sum_y / R
    var = jnp.maximum(sum_sq / R - mean * mean, 0.0)           # E[y^2] - mean^2
    inv = jax.lax.rsqrt(var + EPS)
    g32 = gamma.astype(jnp.float32)
    scale = (g32 * inv).reshape(Cout, 1)
    shift = (beta.astype(jnp.float32) - mean * g32 * inv).reshape(Cout, 1)

    # ----- pass 2: fused normalize + sigmoid -----
    bytes2 = int(2 * Cout * r_pad * 4 + 2 * Cout * 4)
    out_t = pl.pallas_call(
        _bn_sigmoid_kernel,
        out_shape=jax.ShapeDtypeStruct((Cout, r_pad), jnp.float32),
        grid=(num_tiles,),
        in_specs=[
            pl.BlockSpec((Cout, 1), lambda r: (0, 0)),
            pl.BlockSpec((Cout, 1), lambda r: (0, 0)),
            pl.BlockSpec((Cout, tile_r), lambda r: (0, r)),
        ],
        out_specs=pl.BlockSpec((Cout, tile_r), lambda r: (0, r)),
        compiler_params=pltpu.CompilerParams(dimension_semantics=("parallel",)),
        cost_estimate=pl.CostEstimate(flops=int(4 * Cout * r_pad),
                                      transcendentals=int(Cout * r_pad),
                                      bytes_accessed=bytes2),
    )(scale, shift, y_t)

    # rows are ordered (N, Ho, Wo); channels are on the leading axis -> back to NCHW
    out = out_t[:, :R].reshape(Cout, N, Ho, Wo).transpose(1, 0, 2, 3)
    return out


def _reference_forward(x, v, g, bias, gamma, beta, *, kernel_size, stride, padding):
    """Pure-JAX f32 reference (lax.conv) for a sanity check."""
    Cout = v.shape[0]
    v_norm = jnp.sqrt(jnp.sum(v ** 2, axis=(1, 2, 3), keepdims=True))
    w = g.reshape(Cout, 1, 1, 1) * v / v_norm
    p = padding
    x_pad = jnp.pad(x, ((0, 0), (0, 0), (p, p), (p, p)), mode="wrap")
    y = jax.lax.conv_general_dilated(
        x_pad, w, window_strides=(stride, stride), padding="VALID",
        dimension_numbers=("NCHW", "OIHW", "NCHW"))
    y = y + bias.reshape(1, Cout, 1, 1)
    mean = jnp.mean(y, axis=(0, 2, 3), keepdims=True)
    var = jnp.mean((y - mean) ** 2, axis=(0, 2, 3), keepdims=True)
    yn = (y - mean) * jax.lax.rsqrt(var + EPS)
    yn = yn * gamma.reshape(1, Cout, 1, 1) + beta.reshape(1, Cout, 1, 1)
    return jax.nn.sigmoid(yn)


if __name__ == "__main__":
    # Module hyper-parameters (small, consistent with a U-net encoder block)
    input_channels = 4
    hidden_channels = 8
    input_kernel_size = 4
    input_stride = 2
    input_padding = 1

    N, H, W = 2, 16, 16

    key = jax.random.PRNGKey(0)
    kx, kv, kb = jax.random.split(key, 3)

    x = jax.random.normal(kx, (N, input_channels, H, W), dtype=jnp.float32)

    # weight_norm(Conv2d) parameters: v (Cout,Cin,k,k), g (Cout,), bias (Cout,)
    v = jax.random.normal(
        kv, (hidden_channels, input_channels, input_kernel_size, input_kernel_size),
        dtype=jnp.float32) * 0.1
    g = jnp.sqrt(jnp.sum(v ** 2, axis=(1, 2, 3)))      # weight_norm init convention
    bias = jax.random.normal(kb, (hidden_channels,), dtype=jnp.float32) * 0.05

    # BatchNorm2d default init: weight=1, bias=0
    gamma = jnp.ones((hidden_channels,), dtype=jnp.float32)
    beta = jnp.zeros((hidden_channels,), dtype=jnp.float32)

    fwd = functools.partial(
        encoder_block_forward,
        kernel_size=input_kernel_size, stride=input_stride, padding=input_padding)

    out = jax.block_until_ready(fwd(x, v, g, bias, gamma, beta))

    ref = jax.block_until_ready(
        _reference_forward(x, v, g, bias, gamma, beta,
                           kernel_size=input_kernel_size,
                           stride=input_stride, padding=input_padding))

    assert out.shape == (N, hidden_channels, 8, 8), out.shape
    max_err = float(jnp.max(jnp.abs(out - ref)))
    # bf16 MXU operands + approx reciprocal -> loosened tolerance vs the f32 reference
    assert jnp.allclose(out, ref, atol=2e-2, rtol=2e-2), max_err

    print("KERNEL_OK")
</pallas_src>

<mosaic_0001>
module attributes {stable_mosaic.version = 11 : i64} {
  func.func @_conv_stats_kernel(%arg0: i32, %arg1: memref<8x64xbf16, #tpu.memory_space<vmem>>, %arg2: memref<64x128xbf16, #tpu.memory_space<vmem>>, %arg3: memref<8x128xf32, #tpu.memory_space<vmem>>, %arg4: memref<16x128xf32, #tpu.memory_space<vmem>>) attributes {dimension_semantics = [#tpu.dimension_semantics<parallel>], iteration_bounds = array<i64: 1>, scalar_prefetch = 0 : i64, scratch_operands = 0 : i64, tpu.core_type = #tpu.core_type<tc>, window_params = [{pipeline_mode = #tpu.pipeline_mode<synchronous>, transform_indices = @transform_0, window_bounds = array<i64: 8, 64>}, {transform_indices = @transform_1, window_bounds = array<i64: 64, 128>}, {transform_indices = @transform_2, window_bounds = array<i64: 8, 128>}, {transform_indices = @transform_3, window_bounds = array<i64: 16, 128>}]} {
    %c0 = arith.constant 0 : index
    %c0_0 = arith.constant 0 : index
    %0 = vector.load %arg1[%c0, %c0_0] : memref<8x64xbf16, #tpu.memory_space<vmem>>, vector<8x64xbf16>
    %c0_1 = arith.constant 0 : index
    %c0_2 = arith.constant 0 : index
    %1 = vector.load %arg2[%c0_1, %c0_2] : memref<64x128xbf16, #tpu.memory_space<vmem>>, vector<64x128xbf16>
    %cst = arith.constant dense<0.000000e+00> : vector<8x128xf32>
    %2 = tpu.matmul %0, %1, %cst {dimension_numbers = #tpu.dot_dimension_numbers<[1], [0], [0], [1], [0, 0, 1, 1], [], []>} : vector<8x64xbf16>, vector<64x128xbf16>, vector<8x128xf32> -> vector<8x128xf32>
    %c0_3 = arith.constant 0 : index
    %c0_4 = arith.constant 0 : index
    %3 = vector.load %arg3[%c0_3, %c0_4] : memref<8x128xf32, #tpu.memory_space<vmem>>, vector<8x128xf32>
    tpu.vector_store %arg3[%c0_3, %c0_4], %2 {strides = array<i32>} : memref<8x128xf32, #tpu.memory_space<vmem>>, vector<8x128xf32>,
    %cst_5 = arith.constant dense<0.000000e+00> : vector<8xf32>
    %4 = vector.multi_reduction <add>, %2, %cst_5 [1] : vector<8x128xf32> to vector<8xf32>
    %5 = vector.shape_cast %4 : vector<8xf32> to vector<8x1xf32>
    %6 = arith.mulf %2, %2 : vector<8x128xf32>
    %cst_6 = arith.constant dense<0.000000e+00> : vector<8xf32>
    %7 = vector.multi_reduction <add>, %6, %cst_6 [1] : vector<8x128xf32> to vector<8xf32>
    %8 = vector.shape_cast %7 : vector<8xf32> to vector<8x1xf32>
    %9 = vector.shape_cast %5 : vector<8x1xf32> to vector<8x1xf32>
    %10 = vector.broadcast %9 : vector<8x1xf32> to vector<8x128xf32>
    %c0_7 = arith.constant 0 : index
    %c0_8 = arith.constant 0 : index
    %11 = vector.load %arg4[%c0_7, %c0_8] : memref<16x128xf32, #tpu.memory_space<vmem>>, vector<8x128xf32>
    tpu.vector_store %arg4[%c0_7, %c0_8], %10 {strides = array<i32>} : memref<16x128xf32, #tpu.memory_space<vmem>>, vector<8x128xf32>,
    %12 = vector.shape_cast %8 : vector<8x1xf32> to vector<8x1xf32>
    %13 = vector.broadcast %12 : vector<8x1xf32> to vector<8x128xf32>
    %c8 = arith.constant 8 : index
    %c0_9 = arith.constant 0 : index
    %14 = vector.load %arg4[%c8, %c0_9] : memref<16x128xf32, #tpu.memory_space<vmem>>, vector<8x128xf32>
    tpu.vector_store %arg4[%c8, %c0_9], %13 {strides = array<i32>} : memref<16x128xf32, #tpu.memory_space<vmem>>, vector<8x128xf32>,
    return
  }
  func.func @transform_0(%arg0: i32) -> (i32, i32) {
    %c0_i32 = arith.constant 0 : i32
    %c0_i32_0 = arith.constant 0 : i32
    %c0_i32_1 = arith.constant 0 : i32
    return %c0_i32, %c0_i32_0 : i32, i32
  }
  func.func @transform_1(%arg0: i32) -> (i32, i32) {
    %c0_i32 = arith.constant 0 : i32
    %c0_i32_0 = arith.constant 0 : i32
    return %c0_i32, %arg0 : i32, i32
  }
  func.func @transform_2(%arg0: i32) -> (i32, i32) {
    %c0_i32 = arith.constant 0 : i32
    %c0_i32_0 = arith.constant 0 : i32
    return %c0_i32, %arg0 : i32, i32
  }
  func.func @transform_3(%arg0: i32) -> (i32, i32) {
    %c0_i32 = arith.constant 0 : i32
    %c0_i32_0 = arith.constant 0 : i32
    return %c0_i32, %arg0 : i32, i32
  }
}

</mosaic_0001>

<bundles_post_ra>
// kernel: tpu_custom_call.1
= control target key start
LH: loop header
LB: loop body
LE: loop exit
PB: predicated region body
PF: predicated region fallthrough
CT: control target
= control target key end

     0   :  { %9 = vsyncpa [#allocation3], 0  ;;  %s325_s0 = inlined_call_operand.hbm [shape: bf16[8,64], index: 0, kind: input, shape index: {}]   ;;  %s326_s1 = inlined_call_operand.hbm [shape: bf16[64,128], index: 1, kind: input, shape index: {}]   ;;  %s327_s2 = inlined_call_operand.hbm [shape: f32[8,128], index: 2, kind: output, shape index: {0}]   ;;  %s328_s3 = inlined_call_operand.hbm [shape: f32[16,128], index: 3, kind: output, shape index: {1}]  }
   0x1   :  { %10 = vsyncpa [#allocation6], 0 }
   0x2   :  { %11 = vsyncpa [#allocation4], 0 }
   0x3   :  { %12 = vsyncpa [#allocation9], 0  ;;  %s283_s12 = smov [#allocation2]   ;;  %s284_s14 = smov [#allocation5]  }
   0x4   :  { %s19_s13 = sshll.u32 %s283_s12, 4  ;;  %s28_s15 = sshll.u32 %s284_s14, 4  ;;  %s20_s13 = int_to_ptr.vmem [resolvable:$true] %s19_s13  ;;  %s29_s15 = int_to_ptr.vmem [resolvable:$true] %s28_s15 }
   0x5   :  { %s203_s16 = scalar_lea.vmem %s20_s13, 64  ;;  %p208_p1 = scmp.lt.s32.totalorder %s20_s13, %s20_s13 }
   0x6   :  { %p204_p0 = scmp.ne.s32.totalorder %s20_s13, %s203_s16  ;;  %p209_p2 = scmp.lt.s32.totalorder %s203_s16, %s203_s16 }
   0x8   :  { %p210_p3 = por %p209_p2, %p208_p1 }
   0xa   :  { %p211_p4 = pnand %p210_p3, %p204_p0 }
   0xc   :  { %214 = shalt.err (!%p211_p4)
}
   0xd   :  { %22 = dma.hbm_to_vmem [thread:$0]  %s325_s0, 64, %s20_s13, [#allocation3]  }
   0xe   :  { %s223_s19 = scalar_lea.vmem %s29_s15, 512  ;;  %p228_p6 = scmp.lt.s32.totalorder %s29_s15, %s29_s15 }
   0xf   :  { %p224_p5 = scmp.ne.s32.totalorder %s29_s15, %s223_s19  ;;  %p229_p7 = scmp.lt.s32.totalorder %s223_s19, %s223_s19 }
  0x11   :  { %p230_p8 = por %p229_p7, %p228_p6 }
  0x13   :  { %p231_p9 = pnand %p230_p8, %p224_p5 }
  0x15   :  { %234 = shalt.err (!%p231_p9)
}
  0x16   :  { %s285_s20 = smov 64   ;;  %s286_s21 = smov 4  }
  0x17   :  { %34 = dma.hbm_to_vmem [thread:$0]  %s326_s1, 512, %s29_s15, [#allocation6], %s285_s20, %s285_s20, %s286_s21  }
  0x18   :  { %275 = dma.done.wait [#allocation3], 64  }
  0x19   :  { %276 = vsyncadd [#allocation3], 4294967232 }
  0x1a   :  { %277 = dma.done.wait [#allocation6], 512  }
  0x1b   :  { %278 = vsyncadd [#allocation6], 4294966784  ;;  %v287_v0 = vmov 0.0   ;;  %vm288_vm0 = vmmov 0   ;;  %v191_v1 = vld [vmem:[#allocation5 + $0x18] sm:$0xff]   ;;  %v192_v2 = vld [vmem:[#allocation5 + $0x10] sm:$0xff]  }
  0x1c   :  { %169 = vmatprep.subr.bf16.mxu0 %v287_v0  ;;  %177 = vmatprep.mubr.msk.bf16.mxu0 %vm288_vm0, %v287_v0  ;;  %v193_v3 = vld [vmem:[#allocation5 + $0x8] sm:$0xff]   ;;  %v194_v4 = vld [vmem:[#allocation5] sm:$0xff]   ;;  %v42_v5 = vld [vmem:[#allocation2] sm:$0xf]  ;;  %vm75_vm1 = vcmask 523264   ;;  %s289_s0 = smov [#allocation7]  }
  0x1d   :  { %170 = vmatpush3.bf16.msra.mxu0 %v191_v1  ;;  %s133_s1 = sshll.u32 %s289_s0, 4  ;;  %s134_s1 = int_to_ptr.vmem [resolvable:$true] %s133_s1 }
  0x1e   :  { %171 = vmatprep.subr.bf16.mxu0 %v287_v0  ;;  %s235_s24 = scalar_lea.vmem %s134_s1, 128  ;;  %p240_p11 = scmp.lt.s32.totalorder %s134_s1, %s134_s1 }
  0x1f   :  { %p236_p10 = scmp.ne.s32.totalorder %s134_s1, %s235_s24  ;;  %p241_p12 = scmp.lt.s32.totalorder %s235_s24, %s235_s24 }
  0x21   :  { %172 = vmatpush3.bf16.msra.mxu0 %v192_v2  ;;  %p242_p13 = por %p241_p12, %p240_p11 }
  0x22   :  { %173 = vmatprep.subr.bf16.mxu0 %v287_v0 }
  0x23   :  { %p243_p0 = pnand %p242_p13, %p236_p10 }
  0x25   :  { %174 = vmatpush3.bf16.msra.mxu0 %v193_v3 }
  0x26   :  { %175 = vmatprep.subr.bf16.mxu0 %v287_v0 }
  0x29   :  { %176 = vmatpush3.bf16.msra.mxu0 %v194_v4 }
  0x2c   :  { %178 = vmatmul.mubr.msk.bf16.vlgmr.msra.gmra.mxu0 %vm75_vm1, %v42_v5 }
  0xec   :  { %v113_v6 = vpop.f32.mrf.mxu0 }
  0xed   :  { %119 = vst [vmem:[#allocation7] sm:$0xff] %v113_v6  ;;  %120 = vadd.xlane.f32.xlu0 %v113_v6  ;;  %v122_v8 = vmul.f32 %v113_v6, %v113_v6 }
  0xee   :  { %v179_v7 = vpop.f32.mrf.mxu0 }
  0xf0   :  { %v116_v9 = vpop.f32.mrf.mxu0 }
  0xf1   :  { %123 = vadd.xlane.f32.xlu0 %v122_v8 }
  0xf2   :  { %v180_v10 = vpop.f32.mrf.mxu0 }
  0xf3   :  { %246 = shalt.err (!%p243_p0)
}
  0xf4   :  { %136 = dma.vmem_to_hbm [thread:$0]  %s134_s1, 128, %s327_s2, [#allocation4]  }
  0xf5   :  { %s290_s27 = smov [#allocation8]  }
  0xf6   :  { %s142_s28 = sshll.u32 %s290_s27, 4  ;;  %s143_s28 = int_to_ptr.vmem [resolvable:$true] %s142_s28 }
  0xf7   :  { %s255_s29 = scalar_lea.vmem %s143_s28, 256  ;;  %p260_p2 = scmp.lt.s32.totalorder %s143_s28, %s143_s28 }
  0xf8   :  { %p256_p1 = scmp.ne.s32.totalorder %s143_s28, %s255_s29  ;;  %p261_p3 = scmp.lt.s32.totalorder %s255_s29, %s255_s29 }
  0xfa   :  { %p262_p4 = por %p261_p3, %p260_p2 }
  0xfc   :  { %p263_p5 = pnand %p262_p4, %p256_p1 }
 0x176   :  { %v121_v11 = vpop.xlane.xlu0 %120 }
 0x177   :  { %125 = vst [vmem:[#allocation8] sm:$0xff] %v121_v11 }
 0x17a   :  { %v124_v12 = vpop.xlane.xlu0 %123 }
 0x17b   :  { %126 = vst [vmem:[#allocation8 + $0x8] sm:$0xff] %v124_v12 }
 0x17c   :  { %266 = shalt.err (!%p263_p5)
}
 0x17d   :  { %s291_s30 = smov 128   ;;  %s292_s4 = smov 8  }
 0x17e   :  { %148 = dma.vmem_to_hbm [thread:$0]  %s143_s28, 256, %s328_s3, [#allocation9], %s291_s30, %s291_s30, %s292_s4  }
 0x17f   :  { %279 = dma.done.wait [#allocation4], 128  }
 0x180   :  { %280 = vsyncadd [#allocation4], 4294967168 }
 0x181   :  { %281 = dma.done.wait [#allocation9], 256  }
 0x182   :  { %282 = vsyncadd [#allocation9], 4294967040 }
 0x183   :  { %155 = vsyncpa [#allocation3], 1 }
 0x184   :  { %156 = vsyncpa [#allocation6], 1 }
 0x185   :  { %157 = vsyncpa [#allocation4], 1 }
 0x186   :  { %158 = vsyncpa [#allocation9], 1 }

</bundles_post_ra>
